<compile_context>
chip_gen: v7x
topology: tpu7x:2x2x1
jax: 0.10.0
libtpu: 0.0.40
codegen_flags: <defaults>
</compile_context>

<pallas_src>
import functools

import jax
import jax.numpy as jnp
from jax.experimental import pallas as pl
from jax.experimental.pallas import tpu as pltpu

SUBLANE = 8  # f32 second-to-last-dim alignment


def _round_up(x, m):
    return (x + m - 1) // m * m


def mlp_kernel(x_ref, w1_ref, b1_ref, gamma_ref, beta_ref, w2_ref, b2_ref, o_ref):
    """fc1 -> LayerNorm -> ReLU -> fc2 on one (tile_b, D_in) batch tile."""
    # ---- fc1 (MXU): native operand dtypes, f32 accumulation. ----
    h = jnp.dot(x_ref[...], w1_ref[...], preferred_element_type=jnp.float32)
    h = h + b1_ref[...].astype(jnp.float32)

    # ---- LayerNorm over the hidden dim (f32 math, eps matches PyTorch).
    #      Single-pass moments (one traversal feeds sum(h) and sum(h*h));
    #      variance clamped >= 0 against catastrophic cancellation. ----
    inv_h = jnp.float32(1.0 / h.shape[-1])
    mean = jnp.sum(h, axis=-1, keepdims=True) * inv_h
    mean_sq = jnp.sum(h * h, axis=-1, keepdims=True) * inv_h
    var = jnp.maximum(mean_sq - mean * mean, 0.0)
    hn = (h - mean) * jax.lax.rsqrt(var + jnp.float32(1e-5))   # rsqrt -> EUP slot
    hn = hn * gamma_ref[...].astype(jnp.float32) + beta_ref[...].astype(jnp.float32)

    # ---- ReLU ----
    hr = jnp.maximum(hn, 0.0)

    # ---- fc2 (MXU): cast activations once to the weight dtype for the dot. ----
    out = jnp.dot(hr.astype(w2_ref.dtype), w2_ref[...],
                  preferred_element_type=jnp.float32)
    out = out + b2_ref[...].astype(jnp.float32)
    o_ref[...] = out.astype(o_ref.dtype)


def prepare_mlp_params(w1, b1, gamma, beta, w2, b2, *, param_dtype=None):
    """One-time parameter packing (call OUTSIDE the hot path).

    Expects weights already stored transposed vs. PyTorch:
        w1: (D_in, H),  w2: (H, D_out)   (equivalent to x @ weight.T)
    Biases / LN params are reshaped to 2-D (1, F) rows; optionally cast the
    weight matrices to bf16 for higher MXU rate / lower DMA (accumulation in
    the kernel stays f32).
    """
    if param_dtype is not None:
        w1 = w1.astype(param_dtype)
        w2 = w2.astype(param_dtype)
    H = w1.shape[1]
    D_out = w2.shape[1]
    return (w1, b1.reshape(1, H), gamma.reshape(1, H), beta.reshape(1, H),
            w2, b2.reshape(1, D_out))


def _vmem_capacity_bytes():
    try:
        return int(pltpu.get_tpu_info().vmem_capacity_bytes)
    except Exception:
        return 128 << 20  # conservative v5e/v6e default


@functools.partial(jax.jit, static_argnames=("max_tile_b",))
def mlp_forward(x, w1, b1, gamma, beta, w2, b2, *, max_tile_b=512):
    """Fused MLP forward.  Params must come from prepare_mlp_params()."""
    B, D_in = x.shape
    H = w1.shape[1]
    D_out = w2.shape[1]
    out_dtype = x.dtype

    # ---- batch tiling: no padding; partial last block masked on writeback.
    tile_b = min(max_tile_b, _round_up(B, SUBLANE))
    grid_b = pl.cdiv(B, tile_b)
    # Megacore: prefer >= 2 grid steps when the batch allows it (v7x: 2 TCs).
    if grid_b == 1 and B >= 2 * SUBLANE:
        tile_b = _round_up(pl.cdiv(B, 2), SUBLANE)
        grid_b = pl.cdiv(B, tile_b)

    # ---- VMEM budget: resident weights + double-buffered activation tiles.
    xb = jnp.dtype(x.dtype).itemsize
    wb = jnp.dtype(w1.dtype).itemsize
    pb = jnp.dtype(b1.dtype).itemsize
    need = (2 * tile_b * (D_in + D_out) * xb          # x / out tiles (double-buffered)
            + 2 * (D_in * H + H * D_out) * wb         # weight blocks
            + 2 * (3 * H + D_out) * pb)               # biases / LN params
    capacity = _vmem_capacity_bytes()
    vmem_limit = int(min(max(need + (4 << 20), 32 << 20), capacity - (8 << 20)))

    cost = pl.CostEstimate(
        flops=2 * B * (D_in * H + H * D_out),
        transcendentals=B,  # one rsqrt per row
        bytes_accessed=int(
            B * D_in * xb
            + (D_in * H + H * D_out) * wb
            + (3 * H + D_out) * pb
            + B * D_out * jnp.dtype(out_dtype).itemsize),
    )

    const = lambda i: (0, 0)  # grid-invariant blocks: DMA'd once, stay resident

    out = pl.pallas_call(
        mlp_kernel,
        out_shape=jax.ShapeDtypeStruct((B, D_out), out_dtype),
        grid_spec=pltpu.PrefetchScalarGridSpec(
            num_scalar_prefetch=0,
            grid=(grid_b,),
            in_specs=[
                pl.BlockSpec((tile_b, D_in), lambda i: (i, 0)),   # x tile
                pl.BlockSpec((D_in, H), const),                   # W1
                pl.BlockSpec((1, H), const),                      # b1
                pl.BlockSpec((1, H), const),                      # gamma
                pl.BlockSpec((1, H), const),                      # beta
                pl.BlockSpec((H, D_out), const),                  # W2
                pl.BlockSpec((1, D_out), const),                  # b2
            ],
            out_specs=pl.BlockSpec((tile_b, D_out), lambda i: (i, 0)),
        ),
        compiler_params=pltpu.CompilerParams(
            dimension_semantics=("parallel",),
            vmem_limit_bytes=vmem_limit,
        ),
        cost_estimate=cost,
    )(x, w1, b1, gamma, beta, w2, b2)

    return out


if __name__ == "__main__":
    # Small shapes consistent with MLP(input_dim, output_dim, hidden_dim).
    batch, input_dim, hidden_dim, output_dim = 16, 32, 128, 16

    key = jax.random.PRNGKey(0)
    kx, kw1, kb1, kw2, kb2 = jax.random.split(key, 5)

    x = jax.random.normal(kx, (batch, input_dim), dtype=jnp.float32)

    # Parameters (shapes match nn.Linear / nn.LayerNorm), weights stored
    # pre-transposed as (in_features, out_features).
    w1 = jax.random.normal(kw1, (input_dim, hidden_dim), dtype=jnp.float32) * 0.05
    b1 = jax.random.normal(kb1, (hidden_dim,), dtype=jnp.float32) * 0.05
    gamma = jnp.ones((hidden_dim,), dtype=jnp.float32)   # LayerNorm default weight
    beta = jnp.zeros((hidden_dim,), dtype=jnp.float32)   # LayerNorm default bias
    w2 = jax.random.normal(kw2, (hidden_dim, output_dim), dtype=jnp.float32) * 0.05
    b2 = jax.random.normal(kb2, (output_dim,), dtype=jnp.float32) * 0.05

    # One-time parameter packing outside the jitted forward (use
    # param_dtype=jnp.bfloat16 in production for ~2-4x MXU rate / half DMA).
    params = prepare_mlp_params(w1, b1, gamma, beta, w2, b2, param_dtype=None)

    out = mlp_forward(x, *params)
    out = jax.block_until_ready(out)

    # Pure-JAX reference of the same forward semantics.
    h = x @ w1 + b1
    mu = jnp.mean(h, axis=-1, keepdims=True)
    var = jnp.mean((h - mu) ** 2, axis=-1, keepdims=True)
    ref = jnp.maximum((h - mu) / jnp.sqrt(var + 1e-5) * gamma + beta, 0.0) @ w2 + b2

    assert out.shape == (batch, output_dim)
    assert jnp.allclose(out, ref, atol=1e-4, rtol=1e-4)

    print("KERNEL_OK")
</pallas_src>

<mosaic_0001>
module attributes {stable_mosaic.version = 11 : i64} {
  func.func @mlp_kernel(%arg0: i32, %arg1: memref<8x32xf32, #tpu.memory_space<vmem>>, %arg2: memref<32x128xf32, #tpu.memory_space<vmem>>, %arg3: memref<1x128xf32, #tpu.memory_space<vmem>>, %arg4: memref<1x128xf32, #tpu.memory_space<vmem>>, %arg5: memref<1x128xf32, #tpu.memory_space<vmem>>, %arg6: memref<128x16xf32, #tpu.memory_space<vmem>>, %arg7: memref<1x16xf32, #tpu.memory_space<vmem>>, %arg8: memref<8x16xf32, #tpu.memory_space<vmem>>) attributes {dimension_semantics = [#tpu.dimension_semantics<parallel>], iteration_bounds = array<i64: 2>, scalar_prefetch = 0 : i64, scratch_operands = 0 : i64, tpu.core_type = #tpu.core_type<tc>, window_params = [{transform_indices = @transform_0, window_bounds = array<i64: 8, 32>}, {pipeline_mode = #tpu.pipeline_mode<synchronous>, transform_indices = @transform_1, window_bounds = array<i64: 32, 128>}, {pipeline_mode = #tpu.pipeline_mode<synchronous>, transform_indices = @transform_2, window_bounds = array<i64: 1, 128>}, {pipeline_mode = #tpu.pipeline_mode<synchronous>, transform_indices = @transform_3, window_bounds = array<i64: 1, 128>}, {pipeline_mode = #tpu.pipeline_mode<synchronous>, transform_indices = @transform_4, window_bounds = array<i64: 1, 128>}, {pipeline_mode = #tpu.pipeline_mode<synchronous>, transform_indices = @transform_5, window_bounds = array<i64: 128, 16>}, {pipeline_mode = #tpu.pipeline_mode<synchronous>, transform_indices = @transform_6, window_bounds = array<i64: 1, 16>}, {transform_indices = @transform_7, window_bounds = array<i64: 8, 16>}]} {
    %c0 = arith.constant 0 : index
    %c0_0 = arith.constant 0 : index
    %0 = vector.load %arg1[%c0, %c0_0] : memref<8x32xf32, #tpu.memory_space<vmem>>, vector<8x32xf32>
    %c0_1 = arith.constant 0 : index
    %c0_2 = arith.constant 0 : index
    %1 = vector.load %arg2[%c0_1, %c0_2] : memref<32x128xf32, #tpu.memory_space<vmem>>, vector<32x128xf32>
    %cst = arith.constant dense<0.000000e+00> : vector<8x128xf32>
    %2 = tpu.matmul %0, %1, %cst {dimension_numbers = #tpu.dot_dimension_numbers<[1], [0], [0], [1], [0, 0, 1, 1], [], []>} : vector<8x32xf32>, vector<32x128xf32>, vector<8x128xf32> -> vector<8x128xf32>
    %c0_3 = arith.constant 0 : index
    %c0_4 = arith.constant 0 : index
    %3 = vector.load %arg3[%c0_3, %c0_4] : memref<1x128xf32, #tpu.memory_space<vmem>>, vector<1x128xf32>
    %4 = vector.broadcast %3 : vector<1x128xf32> to vector<8x128xf32>
    %5 = arith.addf %2, %4 : vector<8x128xf32>
    %cst_5 = arith.constant dense<0.000000e+00> : vector<8xf32>
    %6 = vector.multi_reduction <add>, %5, %cst_5 [1] : vector<8x128xf32> to vector<8xf32>
    %7 = vector.shape_cast %6 : vector<8xf32> to vector<8x1xf32>
    %cst_6 = arith.constant 7.812500e-03 : f32
    %8 = vector.broadcast %cst_6 : f32 to vector<8x1xf32>
    %9 = arith.mulf %7, %8 : vector<8x1xf32>
    %10 = arith.mulf %5, %5 : vector<8x128xf32>
    %cst_7 = arith.constant dense<0.000000e+00> : vector<8xf32>
    %11 = vector.multi_reduction <add>, %10, %cst_7 [1] : vector<8x128xf32> to vector<8xf32>
    %12 = vector.shape_cast %11 : vector<8xf32> to vector<8x1xf32>
    %cst_8 = arith.constant 7.812500e-03 : f32
    %13 = vector.broadcast %cst_8 : f32 to vector<8x1xf32>
    %14 = arith.mulf %12, %13 : vector<8x1xf32>
    %15 = arith.mulf %9, %9 : vector<8x1xf32>
    %16 = arith.subf %14, %15 : vector<8x1xf32>
    %cst_9 = arith.constant 0.000000e+00 : f32
    %17 = vector.broadcast %cst_9 : f32 to vector<8x1xf32>
    %18 = arith.maximumf %16, %17 : vector<8x1xf32>
    %19 = vector.broadcast %9 : vector<8x1xf32> to vector<8x128xf32>
    %20 = arith.subf %5, %19 : vector<8x128xf32>
    %cst_10 = arith.constant 9.99999974E-6 : f32
    %21 = vector.broadcast %cst_10 : f32 to vector<8x1xf32>
    %22 = arith.addf %18, %21 : vector<8x1xf32>
    %23 = math.rsqrt %22 : vector<8x1xf32>
    %24 = vector.broadcast %23 : vector<8x1xf32> to vector<8x128xf32>
    %25 = arith.mulf %20, %24 : vector<8x128xf32>
    %c0_11 = arith.constant 0 : index
    %c0_12 = arith.constant 0 : index
    %26 = vector.load %arg4[%c0_11, %c0_12] : memref<1x128xf32, #tpu.memory_space<vmem>>, vector<1x128xf32>
    %27 = vector.broadcast %26 : vector<1x128xf32> to vector<8x128xf32>
    %28 = arith.mulf %25, %27 : vector<8x128xf32>
    %c0_13 = arith.constant 0 : index
    %c0_14 = arith.constant 0 : index
    %29 = vector.load %arg5[%c0_13, %c0_14] : memref<1x128xf32, #tpu.memory_space<vmem>>, vector<1x128xf32>
    %30 = vector.broadcast %29 : vector<1x128xf32> to vector<8x128xf32>
    %31 = arith.addf %28, %30 : vector<8x128xf32>
    %cst_15 = arith.constant 0.000000e+00 : f32
    %32 = vector.broadcast %cst_15 : f32 to vector<8x128xf32>
    %33 = arith.maximumf %31, %32 : vector<8x128xf32>
    %c0_16 = arith.constant 0 : index
    %c0_17 = arith.constant 0 : index
    %34 = vector.load %arg6[%c0_16, %c0_17] : memref<128x16xf32, #tpu.memory_space<vmem>>, vector<128x16xf32>
    %cst_18 = arith.constant dense<0.000000e+00> : vector<8x16xf32>
    %35 = tpu.matmul %33, %34, %cst_18 {dimension_numbers = #tpu.dot_dimension_numbers<[1], [0], [0], [1], [0, 0, 1, 1], [], []>} : vector<8x128xf32>, vector<128x16xf32>, vector<8x16xf32> -> vector<8x16xf32>
    %c0_19 = arith.constant 0 : index
    %c0_20 = arith.constant 0 : index
    %36 = vector.load %arg7[%c0_19, %c0_20] : memref<1x16xf32, #tpu.memory_space<vmem>>, vector<1x16xf32>
    %37 = vector.broadcast %36 : vector<1x16xf32> to vector<8x16xf32>
    %38 = arith.addf %35, %37 : vector<8x16xf32>
    %c0_21 = arith.constant 0 : index
    %c0_22 = arith.constant 0 : index
    %39 = vector.load %arg8[%c0_21, %c0_22] : memref<8x16xf32, #tpu.memory_space<vmem>>, vector<8x16xf32>
    tpu.vector_store %arg8[%c0_21, %c0_22], %38 {strides = array<i32>} : memref<8x16xf32, #tpu.memory_space<vmem>>, vector<8x16xf32>,
    return
  }
  func.func @transform_0(%arg0: i32) -> (i32, i32) {
    %c0_i32 = arith.constant 0 : i32
    %c0_i32_0 = arith.constant 0 : i32
    return %arg0, %c0_i32 : i32, i32
  }
  func.func @transform_1(%arg0: i32) -> (i32, i32) {
    %c0_i32 = arith.constant 0 : i32
    %c0_i32_0 = arith.constant 0 : i32
    %c0_i32_1 = arith.constant 0 : i32
    return %c0_i32, %c0_i32_0 : i32, i32
  }
  func.func @transform_2(%arg0: i32) -> (i32, i32) {
    %c0_i32 = arith.constant 0 : i32
    %c0_i32_0 = arith.constant 0 : i32
    %c0_i32_1 = arith.constant 0 : i32
    return %c0_i32, %c0_i32_0 : i32, i32
  }
  func.func @transform_3(%arg0: i32) -> (i32, i32) {
    %c0_i32 = arith.constant 0 : i32
    %c0_i32_0 = arith.constant 0 : i32
    %c0_i32_1 = arith.constant 0 : i32
    return %c0_i32, %c0_i32_0 : i32, i32
  }
  func.func @transform_4(%arg0: i32) -> (i32, i32) {
    %c0_i32 = arith.constant 0 : i32
    %c0_i32_0 = arith.constant 0 : i32
    %c0_i32_1 = arith.constant 0 : i32
    return %c0_i32, %c0_i32_0 : i32, i32
  }
  func.func @transform_5(%arg0: i32) -> (i32, i32) {
    %c0_i32 = arith.constant 0 : i32
    %c0_i32_0 = arith.constant 0 : i32
    %c0_i32_1 = arith.constant 0 : i32
    return %c0_i32, %c0_i32_0 : i32, i32
  }
  func.func @transform_6(%arg0: i32) -> (i32, i32) {
    %c0_i32 = arith.constant 0 : i32
    %c0_i32_0 = arith.constant 0 : i32
    %c0_i32_1 = arith.constant 0 : i32
    return %c0_i32, %c0_i32_0 : i32, i32
  }
  func.func @transform_7(%arg0: i32) -> (i32, i32) {
    %c0_i32 = arith.constant 0 : i32
    %c0_i32_0 = arith.constant 0 : i32
    return %arg0, %c0_i32 : i32, i32
  }
}

</mosaic_0001>

<bundles_post_ra>
// kernel: mlp_forward.1
= control target key start
LH: loop header
LB: loop body
LE: loop exit
PB: predicated region body
PF: predicated region fallthrough
CT: control target
= control target key end

     0   :  { %12 = vsyncpa [#allocation3], 0  ;;  %s1006_s0 = inlined_call_operand.vmem [shape: f32[16,32], index: 0, kind: input, shape index: {}]   ;;  %s1007_s1 = inlined_call_operand.vmem [shape: f32[32,128], index: 1, kind: input, shape index: {}]   ;;  %s1008_s2 = inlined_call_operand.vmem [shape: f32[1,128], index: 2, kind: input, shape index: {}]   ;;  %s1009_s3 = inlined_call_operand.vmem [shape: f32[1,128], index: 3, kind: input, shape index: {}]   ;;  %s1010_s4 = inlined_call_operand.vmem [shape: f32[1,128], index: 4, kind: input, shape index: {}]   ;;  %s1011_s5 = inlined_call_operand.vmem [shape: f32[128,16], index: 5, kind: input, shape index: {}]   ;;  %s1012_s6 = inlined_call_operand.vmem [shape: f32[1,16], index: 6, kind: input, shape index: {}]   ;;  %s1013_s7 = inlined_call_operand.hbm [shape: f32[16,16], index: 7, kind: output, shape index: {}]  }
   0x1   :  { %14 = vsyncpa [#allocation3 + $0x1], 0  ;;  %s824_s24 = smov 0   ;;  %s826_s25 = smov 0  }
   0x2   :  { %s828_s26 = smov 0   ;;  %s830_s27 = smov 0  }
   0x3 LB: > { %s845_s28 = sadd.s32 4294967295, %s778_s27   ;;  %s559_s29 = sadd.s32 4294967294, %s778_s27   ;;  %s778_s27 = sphi %s830_s27, %s1019_s27   ;;  %s774_s26 = sphi %s828_s26, %s1018_s26   ;;  %s770_s25 = sphi %s826_s25, %s1017_s25   ;;  %s766_s24 = sphi %s824_s24, %s1016_s24  }
   0x4   : > { %s849_s30 = sadd.s32 1, %s778_s27   ;;  %s179_s8 = sadd.s32 1, %s774_s26 }
   0x5   : > { %s176_s9 = ssub.s32 %s778_s27, %s849_s30  ;;  %p189_p0 = scmp.ne.s32.totalorder %s774_s26, %s770_s25 }
   0x6   : > { %p177_p1 = scmp.eq.s32.totalorder %s176_s9, 0  ;;  %p190_p2 = scmp.eq.s32.totalorder %s845_s28, 1 }
   0x7   : > { %p195_p3 = scmp.ne.s32.totalorder %s770_s25, %s766_s24  ;;  %p196_p4 = scmp.eq.s32.totalorder %s559_s29, 1 }
   0x8   : > { %s860_s10 = scalar_select %p177_p1, %s774_s26, %s179_s8  }
   0x9   : > { %p862_p5 = por %p190_p2, %p189_p0  ;;  %p866_p6 = por %p196_p4, %p195_p3 }
   0xa   : > { %p562_p7 = scmp.ge.s32.totalorder %s778_s27, 1  ;;  %p239_p8 = scmp.lt.s32.totalorder %s778_s27, 3 }
   0xc   : > { %p240_p9 = pnand %p562_p7, %p239_p8 }
   0xd   : > { %v275_v0 = vld [vmem:[%s1007_s1] sm:$0xff] (!%p240_p9)  ;;  %v276_v1 = vld [vmem:[%s1007_s1 + $0x8] sm:$0xff] (!%p240_p9)  ;;  %v277_v2 = vld [vmem:[%s1007_s1 + $0x10] sm:$0xff] (!%p240_p9)  ;;  %v780_v3 = vmov (!%p240_p9), 0.0|0.0   ;;  %vm781_vm0 = vmmov (!%p240_p9), 0   ;;  %v782_v6 = vmov (!%p240_p9), 0.0  }
   0xe   : > { %243 = sbr.rel (%p240_p9) target bundleno = 641 (0x281), region = 48  ;;  %642 = vmatprep.subr.bf16.mxu0 (!%p240_p9), %v780_v3  ;;  %v643_v4 = vpack.c.bf16 (!%p240_p9), %v276_v1, %v275_v0  ;;  %v278_v5 = vld [vmem:[%s1007_s1 + $0x18] sm:$0xff] (!%p240_p9)  ;;  %604 = vmatprep.mubr.msk.f32.mxu0 (!%p240_p9), %vm781_vm0, %v782_v6  ;;  %p270_p10 = scmp.lt.s32.totalorder (!%p240_p9), %s845_s28, 1  ;;  %vm286_vm1 = vcmask (!%p240_p9), 261120   ;;  %v565_v9 = vld [vmem:[%s1008_s2] ss:$0 sm:$0xff] (!%p240_p9) }
   0xf   : > { %648 = vmatprep.subr.bf16.mxu1 (!%p240_p9), %v780_v3  ;;  %639 = vmatprep.mubr.msk.f32.mxu1 (!%p240_p9), %vm781_vm0, %v782_v6  ;;  %v646_v7 = vpack.c.bf16 (!%p240_p9), %v278_v5, %v277_v2  ;;  %v391_v14 = vld [vmem:[%s1011_s5] sm:$0xff] (!%p240_p9)  ;;  %v392_v15 = vld [vmem:[%s1011_s5 + $0x8] sm:$0xff] (!%p240_p9)  ;;  %v393_v17 = vld [vmem:[%s1011_s5 + $0x10] sm:$0xff] (!%p240_p9)  ;;  %s571_s9 = sshll.u32 (!%p240_p9), %s845_s28, 7  ;;  %vm484_vm2 = vcmask (!%p240_p9), 130048  }
  0x10   : > { %644 = vmatpush3.bf16.msra.mxu0 (!%p240_p9), %v643_v4  ;;  %v649_v16 = vpack.c.bf16 (!%p240_p9), %v392_v15, %v391_v14  ;;  %v394_v18 = vld [vmem:[%s1011_s5 + $0x18] sm:$0xff] (!%p240_p9)  ;;  %v395_v20 = vld [vmem:[%s1011_s5 + $0x20] sm:$0xff] (!%p240_p9)  ;;  %v396_v21 = vld [vmem:[%s1011_s5 + $0x28] sm:$0xff] (!%p240_p9)  ;;  %s964_s17 = scalar_lea.hbm (!%p240_p9), %s1013_s7, %s571_s9 }
  0x11   : > { %645 = vmatprep.subr.bf16.mxu0 (!%p240_p9), %v780_v3  ;;  %v652_v19 = vpack.c.bf16 (!%p240_p9), %v394_v18, %v393_v17  ;;  %v655_v22 = vpack.c.bf16 (!%p240_p9), %v396_v21, %v395_v20  ;;  %v397_v23 = vld [vmem:[%s1011_s5 + $0x30] sm:$0xff] (!%p240_p9)  ;;  %v398_v24 = vld [vmem:[%s1011_s5 + $0x38] sm:$0xff] (!%p240_p9)  ;;  %v399_v26 = vld [vmem:[%s1011_s5 + $0x40] sm:$0xff] (!%p240_p9) }
  0x12   : > { %650 = vmatpush3.bf16.msra.mxu1 (!%p240_p9), %v649_v16  ;;  %v658_v25 = vpack.c.bf16 (!%p240_p9), %v398_v24, %v397_v23  ;;  %v400_v27 = vld [vmem:[%s1011_s5 + $0x48] sm:$0xff] (!%p240_p9)  ;;  %v401_v29 = vld [vmem:[%s1011_s5 + $0x50] sm:$0xff] (!%p240_p9)  ;;  %v402_v30 = vld [vmem:[%s1011_s5 + $0x58] sm:$0xff] (!%p240_p9) }
  0x13   : > { %651 = vmatprep.subr.bf16.mxu1 (!%p240_p9), %v780_v3  ;;  %v661_v28 = vpack.c.bf16 (!%p240_p9), %v400_v27, %v399_v26  ;;  %v664_v31 = vpack.c.bf16 (!%p240_p9), %v402_v30, %v401_v29  ;;  %v403_v32 = vld [vmem:[%s1011_s5 + $0x60] sm:$0xff] (!%p240_p9)  ;;  %v404_v33 = vld [vmem:[%s1011_s5 + $0x68] sm:$0xff] (!%p240_p9)  ;;  %v405_v35 = vld [vmem:[%s1011_s5 + $0x70] sm:$0xff] (!%p240_p9) }
  0x14   : > { %647 = vmatpush3.bf16.msra.mxu0 (!%p240_p9), %v646_v7  ;;  %v667_v34 = vpack.c.bf16 (!%p240_p9), %v404_v33, %v403_v32  ;;  %v406_v36 = vld [vmem:[%s1011_s5 + $0x78] sm:$0xff] (!%p240_p9)  ;;  %v567_v48 = vld [vmem:[%s1009_s3] ss:$0 sm:$0xff] (!%p240_p9) }
  0x15   : > { %s271_s21 = scalar_select %p270_p10, %s845_s28, 1  ;;  %v670_v37 = vpack.c.bf16 %v406_v36, %v405_v35  ;;  %v568_v50 = vld [vmem:[%s1010_s4] ss:$0 sm:$0xff] }
  0x16   : > { %653 = vmatpush3.bf16.msra.mxu1 %v652_v19  ;;  %v569_v54 = vld [vmem:[%s1012_s6] ss:$0 sm:$0xff]  ;;  %s783_s28 = smov [#allocation2]  }
  0x17   : > { %s564_s22 = sshll.u32 %s271_s21, 3  ;;  %654 = vmatprep.subr.bf16.mxu1 %v780_v3  ;;  %s720_s20 = sshll.u32 %s783_s28, 4  ;;  %s721_s20 = int_to_ptr.vmem [resolvable:$false] %s720_s20 }
  0x18   : > { %s273_s8 = scalar_lea.vmem %s1006_s0, %s564_s22  ;;  %s267_s22 = sand.u32 1, %s770_s25  }
  0x19   : > { %v274_v8 = vld [vmem:[%s273_s8] sm:$0xff]  ;;  %s563_s23 = sshll.u32 %s267_s22, 3  ;;  %s487_s18 = scalar_lea.sflag [#allocation3], %s267_s22 }
  0x1a   : > { %605 = vmatmul.mubr.msk.f32.vlgmr.msra.gmra.mrb[0].mxu0 %vm286_vm1, %v274_v8  ;;  %656 = vmatpush3.bf16.msra.mxu1 %v655_v22  ;;  %s269_s13 = scalar_lea.vmem [#allocation2], %s563_s23  ;;  %s722_s21 = scalar_lea.vmem %s721_s20, 256 }
  0x1b   : > { %657 = vmatprep.subr.bf16.mxu1 %v780_v3  ;;  %s500_s14 = sshll.u32 %s269_s13, 4  ;;  %s966_s14 = int_to_ptr.vmem [resolvable:$true] %s500_s14 }
  0x1c   : > { %s716_s19 = scalar_lea.vmem %s966_s14, 128  ;;  %p723_p0 = scmp.lt.s32.totalorder %s966_s14, %s721_s20 }
  0x1d   : > { %p717_p11 = scmp.ne.s32.totalorder %s966_s14, %s716_s19  ;;  %p724_p1 = scmp.lt.s32.totalorder %s722_s21, %s716_s19 }
  0x1e   : > { %659 = vmatpush3.bf16.msra.mxu1 %v658_v25 }
  0x1f   : > { %660 = vmatprep.subr.bf16.mxu1 %v780_v3  ;;  %p718_p12 = pnand %p717_p11, %p862_p5  ;;  %p725_p2 = por %p724_p1, %p723_p0 }
  0x21   : > { %p719_p13 = pneg %p718_p12 }
  0x22   : > { %662 = vmatpush3.bf16.msra.mxu1 %v661_v28 }
  0x23   : > { %663 = vmatprep.subr.bf16.mxu1 %v780_v3  ;;  %p726_p3 = pnand %p725_p2, %p719_p13 }
  0x26   : > { %665 = vmatpush3.bf16.msra.mxu1 %v664_v31 }
  0x27   : > { %666 = vmatprep.subr.bf16.mxu1 %v780_v3 }
  0x2a   : > { %668 = vmatpush3.bf16.msra.mxu1 %v667_v34 }
  0x2b   : > { %669 = vmatprep.subr.bf16.mxu1 %v780_v3 }
  0x2e   : > { %671 = vmatpush3.bf16.msra.mxu1 %v670_v37 }
  0xed   : > { %v356_v10 = vpop.f32.mrb[0].mxu0 }
  0xee   : > { %v357_v11 = vadd.f32 %v565_v9, %v356_v10  ;;  %v606_v12 = vpop.f32.mrb[1].mxu0 }
  0xf0   : > { %360 = vadd.xlane.f32.xlu0 %v357_v11  ;;  %v363_v13 = vmul.f32 %v357_v11, %v357_v11 }
  0xf4   : > { %364 = vadd.xlane.f32.xlu0 %v363_v13 }
 0x17d   : > { %v361_v38 = vpop.xlane.xlu0 %360 }
 0x17e   : > { %v362_v39 = vmul.f32 0.0078125, %v361_v38 }
 0x180   : > { %v367_v41 = vmul.f32 %v362_v39, %v362_v39  ;;  %v370_v46 = vsub.f32 %v357_v11, %v362_v39 }
 0x181   : > { %v365_v40 = vpop.xlane.xlu0 %364 }
 0x182   : > { %v366_v42 = vmul.f32 0.0078125, %v365_v40 }
 0x184   : > { %v368_v43 = vsub.f32 %v366_v42, %v367_v41 }
 0x186   : > { %v369_v44 = vmax.f32 %v368_v43, 0.0 }
 0x188   : > { %v371_v45 = vadd.f32 1e-05, %v369_v44 }
 0x18a   : > { %714 = vrsqrt.f32 %v371_v45 }
 0x194   : > { %v715_v47 = vpop.eup %714 }
 0x195   : > { %v373_v49 = vmul.f32 %v715_v47, %v370_v46 }
 0x197   : > { %v381_v51 = vmul.f32 %v567_v48, %v373_v49 }
 0x199   : > { %v389_v52 = vadd.f32 %v568_v50, %v381_v51 }
 0x19b   : > { %v390_v53 = vmax.f32 %v389_v52, 0.0 }
 0x19d   : > { %640 = vmatmul.mubr.f32.vlgmr.msra.gmra.mrb[0].mxu1 %v390_v53 }
 0x270   : > { %v480_v55 = vpop.f32.mrb[0].mxu1 }
 0x271   : > { %v481_v56 = vadd.f32 %v569_v54, %v480_v55  ;;  %v641_v57 = vpop.f32.mrb[1].mxu1 }
 0x273   : > { %485 = vst.msk [vmem:[%s269_s13] sm:$0xff] %vm484_vm2, %v481_v56 }
 0x274   : > { %729 = shalt.err (!%p726_p3)
}
 0x275   : > { %s730_s22 = scalar_lea.hbm %s964_s17, 128  ;;  %s734_s8 = scalar_lea.hbm %s1013_s7, 256 }
 0x276   : > { %p731_p4 = scmp.ne.s32.totalorder %s964_s17, %s730_s22  ;;  %p735_p9 = scmp.lt.u32.totalorder %s964_s17, %s1013_s7 }
 0x277   : > { %p736_p10 = scmp.lt.u32.totalorder %s734_s8, %s730_s22  ;;  %p738_p12 = scmp.lt.u32.totalorder %s730_s22, %s964_s17 }
 0x278   : > { %p732_p7 = pnand %p731_p4, %p862_p5 }
 0x279   : > { %p737_p11 = por %p736_p10, %p735_p9 }
 0x27a   : > { %p733_p8 = pneg %p732_p7 }
 0x27b   : > { %p739_p13 = por %p738_p12, %p737_p11 }
 0x27d   : > { %p740_p0 = pnand %p739_p13, %p733_p8 }
 0x27f   : > { %743 = shalt.err (!%p740_p0)
}
 0x280   : > { %672 = dma.vmem_to_hbm [thread:$0]  (%p862_p5), %s966_s14, 128, %s964_s17, %s487_s18  }
 0x281 PF: > { %p678_p1 = scmp.ge.s32.totalorder %s778_s27, 2  ;;  %s512_s15 = sand.u32 1, %s766_s24  }
 0x282   : > { %s513_s16 = scalar_lea.sflag [#allocation3], %s512_s15 }
 0x283   : > { %p675_p2 = pnand %p678_p1, %p866_p6 }
 0x285   : > { %761 = dma.done.wait (!%p675_p2), %s513_s16, 128  }
 0x286   : > { %763 = vsyncadd (!%p675_p2), %s513_s16, 4294967168  ;;  %p17_p3 = scmp.ge.s32.totalorder %s849_s30, 4   ;;  %s1016_s24 = smov %s770_s25 }
 0x287   : > { %s1017_s25 = smov %s774_s26  ;;  %s1018_s26 = smov %s860_s10 }
 0x288   : > { %s1019_s27 = smov %s849_s30  ;;  %19 = sbr.rel (!%p17_p3) target bundleno = 3 (0x3), region = 83 }
 0x28f   :  { %518 = vsyncpa [#allocation3], 1 }
 0x290   :  { %520 = vsyncpa [#allocation3 + $0x1], 1 }

</bundles_post_ra>
